<compile_context>
chip_gen: v6e
topology: v6e:2x2x1
jax: 0.10.0
libtpu: 0.0.40
codegen_flags: <defaults>
</compile_context>

<pallas_src>
import numpy as np

import jax
import jax.numpy as jnp
from jax.experimental import pallas as pl
from jax.experimental.pallas import tpu as pltpu


def _round_up(n, m):
    return ((n + m - 1) // m) * m


def resblock_kernel(x_ref, w1_ref, b1_ref, w2_ref, b2_ref, o_ref):
    # x_ref : (TM, Hp) tile of the batch (any float dtype; upcast below)
    # w1/w2 : (Hp, Hp) bf16 weights, VMEM-resident, pre-transposed to (in, out)
    # b1/b2 : (1, Hp)  f32 biases
    x_f32 = x_ref[...].astype(jnp.float32)          # residual path in f32
    x_mx = x_ref[...].astype(w1_ref.dtype)          # bf16 operand for the MXU

    # Linear 1 (bf16 MXU, f32 accumulate) + SiLU (EUP sigmoid + VPU mul)
    h = jnp.dot(x_mx, w1_ref[...], preferred_element_type=jnp.float32) + b1_ref[...]
    h = h * jax.nn.sigmoid(h)

    # Linear 2 (bf16 MXU, f32 accumulate)
    y = jnp.dot(h.astype(w2_ref.dtype), w2_ref[...],
                preferred_element_type=jnp.float32) + b2_ref[...]

    # Residual + outer SiLU, all in f32
    z = x_f32 + y
    o_ref[...] = (z * jax.nn.sigmoid(z)).astype(o_ref.dtype)


def prepare_params(w1_t, b1, w2_t, b2, *, weight_dtype=jnp.bfloat16):
    """One-time parameter prep (hoisted out of the per-call hot path).

    Casts weights to bf16 and zero-pads the hidden dim to a multiple of 128 so the
    kernel sees lane-dense tiles and emits unmasked stores.  Call once at init.
    """
    H = w1_t.shape[0]
    Hp = _round_up(H, 128)

    def pad_w(w):
        w = w.astype(weight_dtype)
        return w if Hp == H else jnp.pad(w, ((0, Hp - H), (0, Hp - H)))

    def pad_b(b):
        b = b.astype(jnp.float32).reshape(1, H)
        return b if Hp == H else jnp.pad(b, ((0, 0), (0, Hp - H)))

    return pad_w(w1_t), pad_b(b1), pad_w(w2_t), pad_b(b2)


def _vmem_limit_bytes(required_bytes):
    try:
        cap = pltpu.get_tpu_info().vmem_capacity_bytes
    except Exception:
        cap = 64 << 20                              # v7x-safe fallback
    headroom_cap = cap - cap // 8                   # leave ~12.5% headroom
    return int(min(max(required_bytes, 32 << 20), headroom_cap))


def residual_block(x, params, *, tm=512, out_dtype=None):
    """x: (B, H) float. params: output of prepare_params(). Returns (B, H)."""
    w1_p, b1_p, w2_p, b2_p = params
    B, H = x.shape
    Hp = w1_p.shape[0]
    out_dtype = x.dtype if out_dtype is None else out_dtype

    # Lane padding only; batch is never padded (Pallas masks the ragged last tile).
    x_p = x if Hp == H else jnp.pad(x, ((0, 0), (0, Hp - H)))

    # Batch tile: multiple of 8, at most the (rounded) batch.
    tm_eff = max(8, min(_round_up(tm, 8), _round_up(B, 8)))
    # Ensure >= 2 grid steps so the "parallel" axis can shard across v7x's 2 TensorCores.
    if pl.cdiv(B, tm_eff) < 2 and B > 8:
        tm_eff = _round_up(pl.cdiv(B, 2), 8)
    grid_m = pl.cdiv(B, tm_eff)

    wbytes = np.dtype(w1_p.dtype).itemsize
    xbytes = np.dtype(x_p.dtype).itemsize
    obytes = np.dtype(out_dtype).itemsize

    # TODO(synk): when 2*Hp*Hp*wbytes approaches the scoped VMEM budget (~Hp >= 3k bf16
    # on v7x), add an N-tiling "arbitrary" grid axis that streams (Hp, tn) weight panels
    # with a (tm, Hp) f32 scratch for h instead of keeping both weights fully resident.
    required = (2 * Hp * Hp * wbytes                # W1 + W2, single-buffered
                + 2 * Hp * 4                        # biases, single-buffered (f32)
                + 2 * tm_eff * Hp * xbytes          # x tile, double-buffered
                + 2 * tm_eff * Hp * obytes          # out tile, double-buffered
                + 4 * tm_eff * Hp * 4               # in-kernel f32/bf16 temporaries
                + (2 << 20))                        # slack

    cost = pl.CostEstimate(
        flops=4 * B * Hp * Hp,                      # two (B,Hp)x(Hp,Hp) matmuls
        transcendentals=2 * B * Hp,                 # two sigmoids per element
        bytes_accessed=(B * Hp * (xbytes + obytes)  # x in + out
                        + 2 * Hp * Hp * wbytes      # weights
                        + 2 * Hp * 4),              # biases
    )

    resident = pl.Buffered(1)                       # grid-invariant blocks: no double buffer
    out = pl.pallas_call(
        resblock_kernel,
        out_shape=jax.ShapeDtypeStruct((B, Hp), out_dtype),
        grid_spec=pltpu.PrefetchScalarGridSpec(
            num_scalar_prefetch=0,
            grid=(grid_m,),
            in_specs=[
                pl.BlockSpec((tm_eff, Hp), lambda i: (i, 0)),                      # x tile
                pl.BlockSpec((Hp, Hp), lambda i: (0, 0), pipeline_mode=resident),  # W1^T
                pl.BlockSpec((1, Hp), lambda i: (0, 0), pipeline_mode=resident),   # b1
                pl.BlockSpec((Hp, Hp), lambda i: (0, 0), pipeline_mode=resident),  # W2^T
                pl.BlockSpec((1, Hp), lambda i: (0, 0), pipeline_mode=resident),   # b2
            ],
            out_specs=pl.BlockSpec((tm_eff, Hp), lambda i: (i, 0)),
        ),
        compiler_params=pltpu.CompilerParams(
            dimension_semantics=("parallel",),
            vmem_limit_bytes=_vmem_limit_bytes(required),
        ),
        cost_estimate=cost,
    )(x_p, w1_p, b1_p, w2_p, b2_p)

    return out if Hp == H else out[:, :H]


def residual_block_ref(x, w1_t, b1, w2_t, b2, weight_dtype=jnp.bfloat16):
    # Mirrors the kernel's precision: bf16 MXU operands, f32 accumulation.
    w1 = w1_t.astype(weight_dtype)
    w2 = w2_t.astype(weight_dtype)
    h = jnp.dot(x.astype(weight_dtype), w1, preferred_element_type=jnp.float32) + b1
    h = jax.nn.silu(h)
    y = jnp.dot(h.astype(weight_dtype), w2, preferred_element_type=jnp.float32) + b2
    return jax.nn.silu(x + y)


if __name__ == "__main__":
    key = jax.random.PRNGKey(0)

    def make_params(k, H):
        kw1, kb1, kw2, kb2 = jax.random.split(k, 4)
        scale = 1.0 / jnp.sqrt(H)
        w1_t = jax.random.uniform(kw1, (H, H), jnp.float32, -1.0, 1.0) * scale
        b1 = jax.random.uniform(kb1, (H,), jnp.float32, -1.0, 1.0) * scale
        w2_t = jax.random.uniform(kw2, (H, H), jnp.float32, -1.0, 1.0) * scale
        b2 = jax.random.uniform(kb2, (H,), jnp.float32, -1.0, 1.0) * scale
        return w1_t, b1, w2_t, b2

    k1, k2, kx1, kx2 = jax.random.split(key, 4)

    # Case 1: original module scale (hidden_dim=32) -- lane-padding path, grid split in 2.
    B1, H1 = 16, 32
    x1 = jax.random.normal(kx1, (B1, H1), dtype=jnp.float32)
    raw1 = make_params(k1, H1)
    params1 = prepare_params(*raw1)                 # one-time cast/pad, outside hot path
    out1 = jax.block_until_ready(residual_block(x1, params1))
    ref1 = residual_block_ref(x1, *raw1)
    assert out1.shape == (B1, H1)
    assert jnp.allclose(out1, ref1, atol=1e-4, rtol=1e-4), "mismatch (H=32 case)"

    # Case 2: lane-dense hidden dim, multiple batch tiles (grid > 1, feeds both TCs on v7x).
    B2, H2 = 512, 128
    x2 = jax.random.normal(kx2, (B2, H2), dtype=jnp.float32)
    raw2 = make_params(k2, H2)
    params2 = prepare_params(*raw2)
    out2 = jax.block_until_ready(residual_block(x2, params2))
    ref2 = residual_block_ref(x2, *raw2)
    assert out2.shape == (B2, H2)
    assert jnp.allclose(out2, ref2, atol=1e-4, rtol=1e-4), "mismatch (H=128 case)"

    print("KERNEL_OK")
</pallas_src>

<mosaic_0001>
module attributes {stable_mosaic.version = 11 : i64} {
  func.func @resblock_kernel(%arg0: i32, %arg1: memref<8x128xf32, #tpu.memory_space<vmem>>, %arg2: memref<128x128xbf16, #tpu.memory_space<vmem>>, %arg3: memref<1x128xf32, #tpu.memory_space<vmem>>, %arg4: memref<128x128xbf16, #tpu.memory_space<vmem>>, %arg5: memref<1x128xf32, #tpu.memory_space<vmem>>, %arg6: memref<8x128xf32, #tpu.memory_space<vmem>>) attributes {dimension_semantics = [#tpu.dimension_semantics<parallel>], iteration_bounds = array<i64: 2>, scalar_prefetch = 0 : i64, scratch_operands = 0 : i64, tpu.core_type = #tpu.core_type<tc>, window_params = [{transform_indices = @transform_0, window_bounds = array<i64: 8, 128>}, {pipeline_mode = #tpu.pipeline_mode<synchronous>, transform_indices = @transform_1, window_bounds = array<i64: 128, 128>}, {pipeline_mode = #tpu.pipeline_mode<synchronous>, transform_indices = @transform_2, window_bounds = array<i64: 1, 128>}, {pipeline_mode = #tpu.pipeline_mode<synchronous>, transform_indices = @transform_3, window_bounds = array<i64: 128, 128>}, {pipeline_mode = #tpu.pipeline_mode<synchronous>, transform_indices = @transform_4, window_bounds = array<i64: 1, 128>}, {transform_indices = @transform_5, window_bounds = array<i64: 8, 128>}]} {
    %c0 = arith.constant 0 : index
    %c0_0 = arith.constant 0 : index
    %0 = vector.load %arg1[%c0, %c0_0] : memref<8x128xf32, #tpu.memory_space<vmem>>, vector<8x128xf32>
    %c0_1 = arith.constant 0 : index
    %c0_2 = arith.constant 0 : index
    %1 = vector.load %arg1[%c0_1, %c0_2] : memref<8x128xf32, #tpu.memory_space<vmem>>, vector<8x128xf32>
    %2 = arith.truncf %1 : vector<8x128xf32> to vector<8x128xbf16>
    %c0_3 = arith.constant 0 : index
    %c0_4 = arith.constant 0 : index
    %3 = vector.load %arg2[%c0_3, %c0_4] : memref<128x128xbf16, #tpu.memory_space<vmem>>, vector<128x128xbf16>
    %cst = arith.constant dense<0.000000e+00> : vector<8x128xf32>
    %4 = tpu.matmul %2, %3, %cst {dimension_numbers = #tpu.dot_dimension_numbers<[1], [0], [0], [1], [0, 0, 1, 1], [], []>} : vector<8x128xbf16>, vector<128x128xbf16>, vector<8x128xf32> -> vector<8x128xf32>
    %c0_5 = arith.constant 0 : index
    %c0_6 = arith.constant 0 : index
    %5 = vector.load %arg3[%c0_5, %c0_6] : memref<1x128xf32, #tpu.memory_space<vmem>>, vector<1x128xf32>
    %6 = vector.broadcast %5 : vector<1x128xf32> to vector<8x128xf32>
    %7 = arith.addf %4, %6 : vector<8x128xf32>
    %8 = arith.negf %7 : vector<8x128xf32>
    %9 = math.exp %8 : vector<8x128xf32>
    %cst_7 = arith.constant 1.000000e+00 : f32
    %10 = vector.broadcast %cst_7 : f32 to vector<8x128xf32>
    %11 = arith.addf %10, %9 : vector<8x128xf32>
    %12 = arith.divf %10, %11 : vector<8x128xf32>
    %13 = arith.mulf %7, %12 : vector<8x128xf32>
    %14 = arith.truncf %13 : vector<8x128xf32> to vector<8x128xbf16>
    %c0_8 = arith.constant 0 : index
    %c0_9 = arith.constant 0 : index
    %15 = vector.load %arg4[%c0_8, %c0_9] : memref<128x128xbf16, #tpu.memory_space<vmem>>, vector<128x128xbf16>
    %cst_10 = arith.constant dense<0.000000e+00> : vector<8x128xf32>
    %16 = tpu.matmul %14, %15, %cst_10 {dimension_numbers = #tpu.dot_dimension_numbers<[1], [0], [0], [1], [0, 0, 1, 1], [], []>} : vector<8x128xbf16>, vector<128x128xbf16>, vector<8x128xf32> -> vector<8x128xf32>
    %c0_11 = arith.constant 0 : index
    %c0_12 = arith.constant 0 : index
    %17 = vector.load %arg5[%c0_11, %c0_12] : memref<1x128xf32, #tpu.memory_space<vmem>>, vector<1x128xf32>
    %18 = vector.broadcast %17 : vector<1x128xf32> to vector<8x128xf32>
    %19 = arith.addf %16, %18 : vector<8x128xf32>
    %20 = arith.addf %0, %19 : vector<8x128xf32>
    %21 = arith.negf %20 : vector<8x128xf32>
    %22 = math.exp %21 : vector<8x128xf32>
    %cst_13 = arith.constant 1.000000e+00 : f32
    %23 = vector.broadcast %cst_13 : f32 to vector<8x128xf32>
    %24 = arith.addf %23, %22 : vector<8x128xf32>
    %25 = arith.divf %23, %24 : vector<8x128xf32>
    %26 = arith.mulf %20, %25 : vector<8x128xf32>
    %c0_14 = arith.constant 0 : index
    %c0_15 = arith.constant 0 : index
    %27 = vector.load %arg6[%c0_14, %c0_15] : memref<8x128xf32, #tpu.memory_space<vmem>>, vector<8x128xf32>
    tpu.vector_store %arg6[%c0_14, %c0_15], %26 {strides = array<i32>} : memref<8x128xf32, #tpu.memory_space<vmem>>, vector<8x128xf32>,
    return
  }
  func.func @transform_0(%arg0: i32) -> (i32, i32) {
    %c0_i32 = arith.constant 0 : i32
    %c0_i32_0 = arith.constant 0 : i32
    return %arg0, %c0_i32 : i32, i32
  }
  func.func @transform_1(%arg0: i32) -> (i32, i32) {
    %c0_i32 = arith.constant 0 : i32
    %c0_i32_0 = arith.constant 0 : i32
    %c0_i32_1 = arith.constant 0 : i32
    return %c0_i32, %c0_i32_0 : i32, i32
  }
  func.func @transform_2(%arg0: i32) -> (i32, i32) {
    %c0_i32 = arith.constant 0 : i32
    %c0_i32_0 = arith.constant 0 : i32
    %c0_i32_1 = arith.constant 0 : i32
    return %c0_i32, %c0_i32_0 : i32, i32
  }
  func.func @transform_3(%arg0: i32) -> (i32, i32) {
    %c0_i32 = arith.constant 0 : i32
    %c0_i32_0 = arith.constant 0 : i32
    %c0_i32_1 = arith.constant 0 : i32
    return %c0_i32, %c0_i32_0 : i32, i32
  }
  func.func @transform_4(%arg0: i32) -> (i32, i32) {
    %c0_i32 = arith.constant 0 : i32
    %c0_i32_0 = arith.constant 0 : i32
    %c0_i32_1 = arith.constant 0 : i32
    return %c0_i32, %c0_i32_0 : i32, i32
  }
  func.func @transform_5(%arg0: i32) -> (i32, i32) {
    %c0_i32 = arith.constant 0 : i32
    %c0_i32_0 = arith.constant 0 : i32
    return %arg0, %c0_i32 : i32, i32
  }
}

</mosaic_0001>

<bundles_post_ra>
// kernel: tpu_custom_call.1
= control target key start
LH: loop header
LB: loop body
LE: loop exit
PB: predicated region body
PF: predicated region fallthrough
CT: control target
= control target key end

     0   :  { %10 = vsyncpa [#allocation3], 0  ;;  %s1169_s0 = inlined_call_operand.hbm [shape: f32[16,128], index: 0, kind: input, shape index: {}]   ;;  %s1170_s1 = inlined_call_operand.hbm [shape: bf16[128,128], index: 1, kind: input, shape index: {}]   ;;  %s1171_s2 = inlined_call_operand.vmem [shape: f32[1,128], index: 2, kind: input, shape index: {}]   ;;  %s1172_s3 = inlined_call_operand.hbm [shape: bf16[128,128], index: 3, kind: input, shape index: {}]   ;;  %s1173_s4 = inlined_call_operand.vmem [shape: f32[1,128], index: 4, kind: input, shape index: {}]   ;;  %s1174_s5 = inlined_call_operand.hbm [shape: f32[16,128], index: 5, kind: output, shape index: {}]  }
   0x1   :  { %12 = vsyncpa [#allocation3 + $0x1], 0 }
   0x2   :  { %13 = vsyncpa [#allocation6], 0 }
   0x3   :  { %14 = vsyncpa [#allocation4], 0 }
   0x4   :  { %16 = vsyncpa [#allocation4 + $0x1], 0  ;;  %s991_s18 = smov 0   ;;  %s993_s19 = smov 0  }
   0x5   :  { %s995_s20 = smov 0   ;;  %s997_s21 = smov 0  }
   0x6 LB: > { %s1012_s22 = sadd.s32 4294967295, %s951_s21   ;;  %s614_s23 = sadd.s32 4294967294, %s951_s21   ;;  %s951_s21 = sphi %s997_s21, %s1196_s21   ;;  %s947_s20 = sphi %s995_s20, %s1195_s20   ;;  %s943_s19 = sphi %s993_s19, %s1194_s19   ;;  %s939_s18 = sphi %s991_s18, %s1193_s18  }
   0x7   : > { %p42_p0 = scmp.ne.s32.totalorder %s943_s19, %s939_s18  ;;  %p1175_p1 = scmp.eq.s32.totalorder %s1012_s22, 0 }
   0x8   : > { %p156_p3 = scmp.eq.s32.totalorder %s614_s23, 1  ;;  %p615_p5 = scmp.ge.s32.totalorder %s951_s21, 1 }
   0x9   : > { %p1021_p4 = por %p1175_p1, %p42_p0  ;;  %p163_p7 = scmp.lt.s32.totalorder %s951_s21, 3 }
   0xa   : > { %p1026_p6 = por %p156_p3, %p42_p0  ;;  %s953_s27 = smov [#allocation5]  }
   0xb   : > { %s1179_s24 = scalar_select %p1021_p4, 1, 0 }
   0xc   : > { %s1180_s25 = scalar_select %p1026_p6, 1, 0 }
   0xd   : > { %p1031_p8 = pnand %p615_p5, %p163_p7  ;;  %s175_s28 = sshll.u32 %s953_s27, 4  ;;  %s176_s28 = int_to_ptr.vmem [resolvable:$true] %s175_s28 }
   0xe   : > { %s954_s30 = smov [#allocation7]   ;;  %s814_s7 = scalar_lea.vmem %s176_s28, 1024 }
   0xf   : > { %s1181_s26 = scalar_select %p1031_p8, 1, 0 }
  0x10   : > { %p720_p9 = pneg %p1031_p8  ;;  %s191_s6 = sshll.u32 %s954_s30, 4  ;;  %s192_s6 = int_to_ptr.vmem [resolvable:$true] %s191_s6 }
  0x11   : > { %p815_p13 = scmp.ne.s32.totalorder %s176_s28, %s814_s7  ;;  %p822_p5 = scmp.lt.s32.totalorder %s176_s28, %s176_s28 }
  0x12   : > { %p1040_p11 = pnand %p720_p9, %p1175_p1  ;;  %p823_p7 = scmp.lt.s32.totalorder %s814_s7, %s814_s7 }
  0x14   : > { %p805_p12 = pneg %p1040_p11  ;;  %p824_p10 = por %p823_p7, %p822_p5 }
  0x16   : > { %p817_p0 = pnand %p815_p13, %p805_p12 }
  0x18   : > { %p818_p3 = pneg %p817_p0 }
  0x1a   : > { %p825_p9 = pnand %p824_p10, %p818_p3 }
  0x1c   : > { %828 = shalt.err (!%p825_p9)
}
  0x1d   : > { %s955_s8 = smov 64   ;;  %s956_s9 = smov 4  }
  0x1e   : > { %723 = dma.hbm_to_vmem [thread:$0]  (!%p1040_p11), %s1170_s1, 1024, %s176_s28, [#allocation6], %s955_s8, %s955_s8, %s956_s9  }
  0x1f   : > { %s840_s12 = scalar_lea.vmem %s192_s6, 1024  ;;  %p848_p2 = scmp.lt.s32.totalorder %s192_s6, %s192_s6 }
  0x20   : > { %p841_p1 = scmp.ne.s32.totalorder %s192_s6, %s840_s12  ;;  %p849_p6 = scmp.lt.s32.totalorder %s840_s12, %s840_s12 }
  0x22   : > { %p843_p13 = pnand %p841_p1, %p805_p12  ;;  %p850_p5 = por %p849_p6, %p848_p2 }
  0x24   : > { %p844_p0 = pneg %p843_p13 }
  0x26   : > { %p851_p10 = pnand %p850_p5, %p844_p0 }
  0x28   : > { %854 = shalt.err (!%p851_p10)
}
  0x29   : > { %726 = dma.hbm_to_vmem [thread:$0]  (!%p1040_p11), %s1172_s3, 1024, %s192_s6, [#allocation6], %s955_s8, %s955_s8, %s956_s9  }
  0x2a   : > { %s1063_s15 = sadd.s32 1, %s951_s21   ;;  %s29_s16 = sadd.s32 1, %s947_s20 }
  0x2b   : > { %s26_s17 = ssub.s32 %s951_s21, %s1063_s15  ;;  %p36_p1 = scmp.ne.s32.totalorder %s947_s20, %s943_s19 }
  0x2c   : > { %p27_p2 = scmp.eq.s32.totalorder %s26_s17, 0  ;;  %p37_p6 = scmp.eq.s32.totalorder %s951_s21, 0 }
  0x2d   : > { %p1183_p12 = scmp.eq.s32.totalorder %s1012_s22, 1  ;;  %p737_p7 = scmp.lt.s32.totalorder %s951_s21, 2 }
  0x2e   : > { %s1079_s27 = scalar_select %p27_p2, %s947_s20, %s29_s16  }
  0x2f   : > { %p1073_p3 = por %p1183_p12, %p36_p1  ;;  %p38_p9 = por %p37_p6, %p36_p1 }
  0x30   : > { %s208_s28 = sand.u32 1, %s947_s20   ;;  %s620_s30 = sshll.u32 %s951_s21, 7 }
  0x31   : > { %s1184_s23 = scalar_select %p1073_p3, 1, 0 }
  0x32   : > { %s619_s29 = sshll.u32 %s208_s28, 3  ;;  %s1086_s8 = scalar_lea.hbm %s1169_s0, %s620_s30 }
  0x33   : > { %s212_s9 = scalar_lea.vmem [#allocation2], %s619_s29  ;;  %p1088_p11 = pnand %p737_p7, %p38_p9 }
  0x34   : > { %s219_s10 = sshll.u32 %s212_s9, 4  ;;  %s209_s12 = scalar_lea.sflag [#allocation3], %s208_s28  ;;  %s220_s10 = int_to_ptr.vmem [resolvable:$true] %s219_s10 }
  0x35   : > { %s855_s13 = scalar_lea.hbm %s1086_s8, 128  ;;  %p857_p0 = pneg %p1088_p11 }
  0x36   : > { %p856_p13 = scmp.ne.s32.totalorder %s1086_s8, %s855_s13  ;;  %s860_s17 = scalar_lea.hbm %s1169_s0, 256 }
  0x37   : > { %p861_p1 = scmp.lt.s32.totalorder %s1086_s8, %s1169_s0  ;;  %p862_p2 = scmp.lt.s32.totalorder %s860_s17, %s855_s13 }
  0x38   : > { %p858_p5 = pnand %p857_p0, %p856_p13 }
  0x39   : > { %p863_p6 = por %p862_p2, %p861_p1 }
  0x3a   : > { %p859_p10 = pneg %p858_p5 }
  0x3c   : > { %p864_p12 = pnand %p863_p6, %p859_p10 }
  0x3e   : > { %867 = shalt.err (!%p864_p12)
}
  0x3f   : > { %s868_s6 = scalar_lea.vmem %s220_s10, 128  ;;  %s957_s28 = smov [#allocation2]  }
  0x40   : > { %p869_p7 = scmp.ne.s32.totalorder %s220_s10, %s868_s6  ;;  %s873_s7 = sshll.u32 %s957_s28, 4  ;;  %s874_s7 = int_to_ptr.vmem [resolvable:$false] %s873_s7 }
  0x41   : > { %s875_s9 = scalar_lea.vmem %s874_s7, 256  ;;  %p876_p13 = scmp.lt.s32.totalorder %s220_s10, %s874_s7 }
  0x42   : > { %p871_p9 = pnand %p869_p7, %p857_p0  ;;  %p877_p5 = scmp.lt.s32.totalorder %s875_s9, %s868_s6 }
  0x44   : > { %p872_p3 = pneg %p871_p9  ;;  %p878_p4 = por %p877_p5, %p876_p13 }
  0x46   : > { %p879_p8 = pnand %p878_p4, %p872_p3 }
  0x48   : > { %882 = shalt.err (!%p879_p8)
}
  0x49   : > { %730 = dma.hbm_to_vmem [thread:$0]  (!%p1088_p11), %s1086_s8, 128, %s220_s10, %s209_s12  }
  0x4a   : > { %p1186_p10 = scmp.ne.s32.totalorder %s1181_s26, 0 }
  0x4b   : > { %s1109_s13 = sand.u32 (!%p1186_p10), 1, %s943_s19   ;;  %p1187_p4 = scmp.ne.s32.totalorder (!%p1186_p10), %s1179_s24, 0 }
  0x4c   : > { %228 = sbr.rel (%p1186_p10) target bundleno = 594 (0x252), region = 40  ;;  %s622_s14 = sshll.u32 (!%p1186_p10), %s1109_s13, 3 }
  0x4d   : > { %s231_s16 = scalar_lea.sflag (!%p1186_p10), [#allocation3], %s1109_s13  ;;  %s1115_s17 = scalar_lea.vmem (!%p1186_p10), [#allocation2], %s622_s14 }
  0x51   : > { %926 = dma.done.wait (%p1187_p4), %s231_s16, 128  }
  0x52   : > { %928 = vsyncadd (%p1187_p4), %s231_s16, 4294967168  ;;  %p1188_p8 = scmp.eq.s32.totalorder %s1012_s22, 0 }
  0x54   : > { %930 = dma.done.wait (%p1188_p8), [#allocation6], 2048   ;;  %p1189_p3 = pmov %p1188_p8 }
  0x55   : > { %v958_v0 = vmov 0.0   ;;  %vm959_vm0 = vmmov 0   ;;  %v779_v1 = vld [vmem:[#allocation5 + $0x38] sm:$0xff]   ;;  %v780_v2 = vld [vmem:[#allocation5 + $0x30] sm:$0xff]   ;;  %v781_v3 = vld [vmem:[#allocation5 + $0x28] sm:$0xff]   ;;  %s647_s11 = sshll.u32 %s1012_s22, 7 }
  0x56   : > { %932 = vsyncadd (%p1189_p3), [#allocation6], 4294965248  ;;  %668 = vmatprep.subr.bf16.mxu0 %v958_v0  ;;  %684 = vmatprep.mubr.msk.bf16.mxu0 %vm959_vm0, %v958_v0  ;;  %v782_v4 = vld [vmem:[#allocation5 + $0x20] sm:$0xff]   ;;  %v783_v5 = vld [vmem:[#allocation5 + $0x18] sm:$0xff]   ;;  %s268_s12 = scalar_lea.vmem [#allocation8], %s622_s14  ;;  %s523_s28 = scalar_lea.hbm %s1174_s5, %s647_s11 }
  0x57   : > { %688 = vmatprep.subr.bf16.mxu1 %v958_v0  ;;  %704 = vmatprep.mubr.msk.bf16.mxu1 %vm959_vm0, %v958_v0  ;;  %v784_v6 = vld [vmem:[#allocation5 + $0x10] sm:$0xff]   ;;  %v785_v7 = vld [vmem:[#allocation5 + $0x8] sm:$0xff]   ;;  %v786_v8 = vld [vmem:[#allocation5] sm:$0xff]   ;;  %s525_s30 = sshll.u32 %s268_s12, 4  ;;  %s512_s7 = scalar_lea.sflag [#allocation4], %s1109_s13  ;;  %s526_s30 = int_to_ptr.vmem [resolvable:$true] %s525_s30 }
  0x58   : > { %669 = vmatpush3.bf16.msra.mxu0 %v779_v1  ;;  %v270_v9 = vld [vmem:[%s1115_s17] sm:$0xff]  ;;  %v789_v13 = vld [vmem:[#allocation7 + $0x28] sm:$0xff]   ;;  %v790_v14 = vld [vmem:[#allocation7 + $0x20] sm:$0xff]   ;;  %s883_s9 = scalar_lea.vmem %s526_s30, 128  ;;  %p1190_p0 = scmp.ne.s32.totalorder %s1184_s23, 0 }
  0x59   : > { %670 = vmatprep.subr.bf16.mxu0 %v958_v0  ;;  %v271_v10 = vpack.c.bf16 %v270_v9, %v270_v9  ;;  %v787_v11 = vld [vmem:[#allocation7 + $0x38] sm:$0xff]   ;;  %v788_v12 = vld [vmem:[#allocation7 + $0x30] sm:$0xff]   ;;  %v793_v17 = vld [vmem:[#allocation7 + $0x8] sm:$0xff]   ;;  %p884_p11 = scmp.ne.s32.totalorder %s526_s30, %s883_s9  ;;  %s960_s16 = smov [#allocation8]  }
  0x5a   : > { %689 = vmatpush3.bf16.msra.mxu1 %v787_v11  ;;  %v791_v15 = vld [vmem:[#allocation7 + $0x18] sm:$0xff]   ;;  %v792_v16 = vld [vmem:[#allocation7 + $0x10] sm:$0xff]   ;;  %v794_v18 = vld [vmem:[#allocation7] sm:$0xff]   ;;  %s887_s17 = sshll.u32 %s960_s16, 4  ;;  %s888_s17 = int_to_ptr.vmem [resolvable:$false] %s887_s17 }
  0x5b   : > { %690 = vmatprep.subr.bf16.mxu1 %v958_v0  ;;  %v626_v19 = vld [vmem:[%s1171_s2] ss:$0 sm:$0xff]  ;;  %p885_p1 = pnand %p884_p11, %p1190_p0  ;;  %s889_s22 = scalar_lea.vmem %s888_s17, 256 }
  0x5c   : > { %671 = vmatpush3.bf16.msra.mxu0 %v780_v2  ;;  %v636_v31 = vld [vmem:[%s1173_s4] ss:$0 sm:$0xff]  ;;  %p890_p6 = scmp.lt.s32.totalorder %s526_s30, %s888_s17  ;;  %p891_p12 = scmp.lt.s32.totalorder %s889_s22, %s883_s9 }
  0x5d   : > { %672 = vmatprep.subr.bf16.mxu0 %v958_v0  ;;  %p886_p2 = pneg %p885_p1 }
  0x5e   : > { %691 = vmatpush3.bf16.msra.mxu1 %v788_v12  ;;  %p892_p7 = por %p891_p12, %p890_p6 }
  0x5f   : > { %692 = vmatprep.subr.bf16.mxu1 %v958_v0 }
  0x60   : > { %673 = vmatpush3.bf16.msra.mxu0 %v781_v3  ;;  %p893_p9 = pnand %p892_p7, %p886_p2 }
  0x61   : > { %674 = vmatprep.subr.bf16.mxu0 %v958_v0 }
  0x62   : > { %693 = vmatpush3.bf16.msra.mxu1 %v789_v13 }
  0x63   : > { %694 = vmatprep.subr.bf16.mxu1 %v958_v0 }
  0x64   : > { %675 = vmatpush3.bf16.msra.mxu0 %v782_v4 }
  0x65   : > { %676 = vmatprep.subr.bf16.mxu0 %v958_v0 }
  0x66   : > { %695 = vmatpush3.bf16.msra.mxu1 %v790_v14 }
  0x67   : > { %696 = vmatprep.subr.bf16.mxu1 %v958_v0 }
  0x68   : > { %677 = vmatpush3.bf16.msra.mxu0 %v783_v5 }
  0x69   : > { %678 = vmatprep.subr.bf16.mxu0 %v958_v0 }
  0x6a   : > { %697 = vmatpush3.bf16.msra.mxu1 %v791_v15 }
  0x6b   : > { %698 = vmatprep.subr.bf16.mxu1 %v958_v0 }
  0x6c   : > { %679 = vmatpush3.bf16.msra.mxu0 %v784_v6 }
  0x6d   : > { %680 = vmatprep.subr.bf16.mxu0 %v958_v0 }
  0x6e   : > { %699 = vmatpush3.bf16.msra.mxu1 %v792_v16 }
  0x6f   : > { %700 = vmatprep.subr.bf16.mxu1 %v958_v0 }
  0x70   : > { %681 = vmatpush3.bf16.msra.mxu0 %v785_v7 }
  0x71   : > { %682 = vmatprep.subr.bf16.mxu0 %v958_v0 }
  0x72   : > { %701 = vmatpush3.bf16.msra.mxu1 %v793_v17 }
  0x73   : > { %702 = vmatprep.subr.bf16.mxu1 %v958_v0 }
  0x74   : > { %683 = vmatpush3.bf16.msra.mxu0 %v786_v8 }
  0x76   : > { %703 = vmatpush3.bf16.msra.mxu1 %v794_v18 }
  0x77   : > { %685 = vmatmul.mubr.bf16.vlgmr.msra.gmra.mxu0 %v271_v10 }
 0x137   : > { %v377_v20 = vpop.f32.mrf.mxu0 }
 0x138   : > { %v378_v21 = vadd.f32 %v626_v19, %v377_v20 }
 0x139   : > { %v686_v22 = vpop.f32.mrf.mxu0 }
 0x13a   : > { %v635_v23 = vmul.f32 -1.442695, %v378_v21 }
 0x13b   : > { %v380_v24 = vpop.f32.mrf.mxu0 }
 0x13c   : > { %795 = vpow2.f32 %v635_v23 }
 0x13d   : > { %v687_v25 = vpop.f32.mrf.mxu0 }
 0x149   : > { %v796_v26 = vpop.eup %795 }
 0x14a   : > { %v386_v27 = vadd.f32 1.0, %v796_v26 }
 0x14c   : > { %797 = vrcp.f32 %v386_v27 }
 0x159   : > { %v798_v28 = vpop.eup %797 }
 0x15a   : > { %v389_v29 = vmul.f32 %v798_v28, %v378_v21 }
 0x15c   : > { %v390_v30 = vpack.c.bf16 %v389_v29, %v389_v29 }
 0x15e   : > { %705 = vmatmul.mubr.bf16.vlgmr.msra.gmra.mxu1 %v390_v30 }
 0x21e   : > { %v496_v32 = vpop.f32.mrf.mxu1 }
 0x21f   : > { %v497_v33 = vadd.f32 %v636_v31, %v496_v32 }
 0x220   : > { %v706_v34 = vpop.f32.mrf.mxu1 }
 0x221   : > { %v502_v35 = vadd.f32 %v497_v33, %v270_v9 }
 0x222   : > { %v499_v36 = vpop.f32.mrf.mxu1 }
 0x223   : > { %v645_v37 = vmul.f32 -1.442695, %v502_v35 }
 0x224   : > { %v707_v38 = vpop.f32.mrf.mxu1 }
 0x225   : > { %799 = vpow2.f32 %v645_v37 }
 0x232   : > { %v800_v39 = vpop.eup %799 }
 0x233   : > { %v506_v40 = vadd.f32 1.0, %v800_v39 }
 0x235   : > { %801 = vrcp.f32 %v506_v40 }
 0x242   : > { %v802_v41 = vpop.eup %801 }
 0x243   : > { %v509_v42 = vmul.f32 %v802_v41, %v502_v35 }
 0x245   : > { %510 = vst [vmem:[%s268_s12] sm:$0xff] %v509_v42 }
 0x246   : > { %896 = shalt.err (!%p893_p9)
}
 0x247   : > { %s897_s14 = scalar_lea.hbm %s523_s28, 128  ;;  %s901_s26 = scalar_lea.hbm %s1174_s5, 256 }
 0x248   : > { %p898_p13 = scmp.ne.s32.totalorder %s523_s28, %s897_s14  ;;  %p902_p4 = scmp.lt.s32.totalorder %s523_s28, %s1174_s5 }
 0x249   : > { %p903_p8 = scmp.lt.s32.totalorder %s901_s26, %s897_s14 }
 0x24a   : > { %p899_p5 = pnand %p898_p13, %p1190_p0 }
 0x24b   : > { %p904_p3 = por %p903_p8, %p902_p4 }
 0x24c   : > { %p900_p10 = pneg %p899_p5 }
 0x24e   : > { %p905_p11 = pnand %p904_p3, %p900_p10 }
 0x250   : > { %908 = shalt.err (!%p905_p11)
}
 0x251   : > { %718 = dma.vmem_to_hbm [thread:$0]  (%p1190_p0), %s526_s30, 128, %s523_s28, %s512_s7  }
 0x252 PF: > { %s537_s11 = sand.u32 1, %s939_s18   ;;  %p1191_p1 = scmp.ne.s32.totalorder %s1180_s25, 0 }
 0x253   : > { %p1192_p2 = scmp.ge.s32.totalorder %s951_s21, 2  ;;  %s538_s12 = scalar_lea.sflag [#allocation4], %s537_s11 }
 0x255   : > { %p732_p6 = pnand %p1192_p2, %p1191_p1 }
 0x257   : > { %p733_p12 = pneg %p732_p6 }
 0x259   : > { %934 = dma.done.wait (%p733_p12), %s538_s12, 128  }
 0x25a   : > { %936 = vsyncadd (%p733_p12), %s538_s12, 4294967168  ;;  %p19_p7 = scmp.ge.s32.totalorder %s1063_s15, 4   ;;  %s1193_s18 = smov %s943_s19 }
 0x25b   : > { %s1194_s19 = smov %s947_s20  ;;  %s1195_s20 = smov %s1079_s27 }
 0x25c   : > { %s1196_s21 = smov %s1063_s15  ;;  %21 = sbr.rel (!%p19_p7) target bundleno = 6 (0x6), region = 93 }
 0x261   :  { %543 = vsyncpa [#allocation3], 1 }
 0x262   :  { %545 = vsyncpa [#allocation3 + $0x1], 1 }
 0x263   :  { %546 = vsyncpa [#allocation6], 1 }
 0x264   :  { %547 = vsyncpa [#allocation4], 1 }
 0x265   :  { %549 = vsyncpa [#allocation4 + $0x1], 1 }

</bundles_post_ra>
